<compile_context>
chip_gen: v5e
topology: v5e:2x2
jax: 0.10.0
libtpu: 0.0.40
codegen_flags: <defaults>
</compile_context>

<pallas_src>
import functools

import jax
import jax.numpy as jnp
import numpy as np
from jax import lax
from jax.experimental import pallas as pl
from jax.experimental.pallas import tpu as pltpu


def _round_up(x, m):
    return (x + m - 1) // m * m


def _mbhead_kernel(x_ref, convpack_ref, w1b1_ref, wfbf_ref, out_ref, pooled_ref,
                   *, c_in, c0, c1, inv_hw):
    # x_ref:        (NB, Cin, HW)   batch tile (f32 or bf16)
    # convpack_ref: (C0, Cin+1)     [ conv_w * bn_scale | bn_shift ]
    # w1b1_ref:     (C0+1, C1)      [ w1 ; b1 ]
    # wfbf_ref:     (C1+1, NCP)     [ wf ; bf ], nc zero-padded to NCP (lane-dense)
    # out_ref:      (1, NB, NCP)
    # pooled_ref:   (NB, C0)        VMEM scratch
    nb = x_ref.shape[0]

    # Weight / shift loaded once per grid step and kept resident across the loop.
    w = convpack_ref[:, :c_in]                       # (C0, Cin)
    shift = convpack_ref[:, c_in:c_in + 1]           # (C0, 1)

    def body(n, carry):
        # 1x1 conv (BN scale folded into w) for one sample: (C0,Cin)@(Cin,HW).
        xn = x_ref[n].astype(jnp.float32)                                   # (Cin, HW)
        h = jnp.dot(w, xn, preferred_element_type=jnp.float32) + shift      # (C0, HW)
        h = jnp.maximum(h, 0.0)                                             # relu
        # AdaptiveAvgPool2d((1,1)): lane-axis reduce; only (C0,HW) is live.
        col = jnp.sum(h, axis=1, keepdims=True) * inv_hw                    # (C0, 1)
        pooled_ref[pl.ds(n, 1), :] = col.T                                  # row n
        return carry

    if nb <= 8:
        unroll = nb
    elif nb % 8 == 0:
        unroll = 8
    else:
        unroll = 1
    lax.fori_loop(0, nb, body, 0, unroll=unroll)

    pooled = pooled_ref[...]                                                # (NB, C0)

    # Linear(C0 -> C1) + h-swish.
    w1 = w1b1_ref[:c0, :]                                                   # (C0, C1)
    b1 = w1b1_ref[c0:c0 + 1, :]                                             # (1, C1)
    z = jnp.dot(pooled, w1, preferred_element_type=jnp.float32) + b1        # (NB, C1)
    z = z * jnp.clip(z + 3.0, 0.0, 6.0) * (1.0 / 6.0)

    # Dropout: identity at inference.  Final fc (lane-dense, nc padded to NCP).
    wf = wfbf_ref[:c1, :]                                                   # (C1, NCP)
    bf = wfbf_ref[c1:c1 + 1, :]                                             # (1, NCP)
    out = jnp.dot(z, wf, preferred_element_type=jnp.float32) + bf           # (NB, NCP)
    out_ref[...] = out[None].astype(out_ref.dtype)


def _pick_batch_tile(n, c_in, hw, itemsize, target_block_bytes=1 << 20):
    """Batch tile from a ~1 MiB VMEM budget, keeping >= min(N,4) grid steps."""
    per_elem = max(1, c_in * hw * itemsize)
    bt = max(1, target_block_bytes // per_elem)
    bt = min(bt, max(1, n // min(n, 4)))       # >= min(N,4) steps: pipelining + megacore
    bt = int(bt)
    while n % bt:                              # must divide N
        bt -= 1
    return bt


def mbhead_pallas(x_nchw, conv_w_folded, bn_shift, w1, b1, wf, bf, *,
                  batch_tile=None):
    """x_nchw: (N, C_in, H, W) float32/bfloat16. Returns (N, nc) float32."""
    N, C_in, H, W = x_nchw.shape
    HW = H * W
    C0 = conv_w_folded.shape[0]
    C1 = w1.shape[1]
    nc = wf.shape[1]
    NCP = _round_up(nc, 128)                   # lane-dense output stores

    x = x_nchw.reshape(N, C_in, HW)            # pure reshape, no extra HBM pass

    if batch_tile is None:
        batch_tile = _pick_batch_tile(N, C_in, HW, x.dtype.itemsize)
    assert N % batch_tile == 0, "batch_tile must divide N"
    grid = (N // batch_tile,)

    # Pack the small parameters into three tiles (fewer DMA streams / buffers).
    conv_pack = jnp.concatenate(
        [conv_w_folded.astype(jnp.float32),
         bn_shift.reshape(C0, 1).astype(jnp.float32)], axis=1)              # (C0, Cin+1)
    w1b1 = jnp.concatenate(
        [w1.astype(jnp.float32), b1.reshape(1, C1).astype(jnp.float32)],
        axis=0)                                                             # (C0+1, C1)
    wf_p = jnp.zeros((C1, NCP), jnp.float32).at[:, :nc].set(wf.astype(jnp.float32))
    bf_p = jnp.zeros((1, NCP), jnp.float32).at[:, :nc].set(
        bf.reshape(1, nc).astype(jnp.float32))
    wfbf = jnp.concatenate([wf_p, bf_p], axis=0)                            # (C1+1, NCP)

    kernel = functools.partial(_mbhead_kernel, c_in=C_in, c0=C0, c1=C1,
                               inv_hw=float(1.0 / HW))

    grid_spec = pltpu.PrefetchScalarGridSpec(
        num_scalar_prefetch=0,
        grid=grid,
        in_specs=[
            pl.BlockSpec((batch_tile, C_in, HW), lambda i: (i, 0, 0)),
            pl.BlockSpec((C0, C_in + 1), lambda i: (0, 0)),
            pl.BlockSpec((C0 + 1, C1), lambda i: (0, 0)),
            pl.BlockSpec((C1 + 1, NCP), lambda i: (0, 0)),
        ],
        # 3-D output block keeps the (batch_tile, NCP) slab dense in VMEM for
        # any batch_tile; wrapper reshapes (G, bt, NCP) -> (N, NCP) for free.
        out_specs=pl.BlockSpec((1, batch_tile, NCP), lambda i: (i, 0, 0)),
        scratch_shapes=[pltpu.VMEM((batch_tile, C0), jnp.float32)],
    )

    flops = 2 * N * (HW * C_in * C0 + C0 * C1 + C1 * NCP)
    bytes_accessed = (x.size * x.dtype.itemsize
                      + 4 * (conv_pack.size + w1b1.size + wfbf.size + N * NCP))
    cost = pl.CostEstimate(flops=int(flops), transcendentals=0,
                           bytes_accessed=int(bytes_accessed))

    out3 = pl.pallas_call(
        kernel,
        out_shape=jax.ShapeDtypeStruct((N // batch_tile, batch_tile, NCP),
                                       jnp.float32),
        grid_spec=grid_spec,
        compiler_params=pltpu.CompilerParams(
            dimension_semantics=("parallel",),
            vmem_limit_bytes=32 * 1024 * 1024,
        ),
        cost_estimate=cost,
    )(x, conv_pack, w1b1, wfbf)

    return out3.reshape(N, NCP)[:, :nc]


def _reference(x_nchw, params, eps=1e-5):
    """Plain-JAX reference with the original (unfolded) conv->BN->act math."""
    N, C_in, H, W = x_nchw.shape
    x = x_nchw.astype(jnp.float32).reshape(N, C_in, H * W)          # (N, Cin, HW)
    h = jnp.einsum("oc,nch->noh", params["conv_w"], x)              # (N, C0, HW)
    scale = params["gamma"] / jnp.sqrt(params["var"] + eps)
    shift = params["beta"] - params["mean"] * scale
    h = h * scale[None, :, None] + shift[None, :, None]
    h = jnp.maximum(h, 0.0)
    pooled = jnp.mean(h, axis=2)                                    # (N, C0)
    z = pooled @ params["w1"] + params["b1"]
    z = z * jnp.clip(z + 3.0, 0.0, 6.0) / 6.0
    return z @ params["wf"] + params["bf"]


def make_params(key, c_in, head_channels, nc, eps=1e-5):
    c0, c1 = head_channels
    ks = jax.random.split(key, 8)
    # Conv2d(w_in, c0, 1, bias=False): torch weight (c0, c_in, 1, 1) -> (c0, c_in)
    conv_w = jax.random.normal(ks[0], (c0, c_in), jnp.float32) * 0.1
    # BatchNorm2d(c0), eval-mode running stats.
    gamma = 1.0 + 0.1 * jax.random.normal(ks[1], (c0,), jnp.float32)
    beta = 0.1 * jax.random.normal(ks[2], (c0,), jnp.float32)
    run_mean = 0.1 * jax.random.normal(ks[3], (c0,), jnp.float32)
    run_var = jnp.abs(jax.random.normal(ks[4], (c0,), jnp.float32)) + 0.5
    scale = gamma / jnp.sqrt(run_var + eps)
    shift = beta - run_mean * scale
    # Linear(c0, c1) and Linear(c1, nc), stored transposed for x @ W layout.
    w1 = jax.random.normal(ks[5], (c0, c1), jnp.float32) * 0.1
    b1 = 0.1 * jax.random.normal(ks[6], (c1,), jnp.float32)
    wf = jax.random.normal(ks[7], (c1, nc), jnp.float32) * 0.1
    bf = jnp.linspace(-0.1, 0.1, nc, dtype=jnp.float32)
    return {
        # raw pieces (used by the reference)
        "conv_w": conv_w, "gamma": gamma, "beta": beta,
        "mean": run_mean, "var": run_var,
        # kernel parameters: BN scale folded into conv weight, shift kept as bias
        "conv_w_folded": conv_w * scale[:, None],   # (C0, C_in)
        "bn_shift": shift,                          # (C0,)
        "w1": w1, "b1": b1, "wf": wf, "bf": bf,
    }


if __name__ == "__main__":
    key = jax.random.PRNGKey(0)
    k_x, k_p, k_x2 = jax.random.split(key, 3)

    C_in, H, W = 4, 16, 16
    head_channels = [32, 64]
    nc = 10
    params = make_params(k_p, C_in, head_channels, nc)

    def run(x, **kw):
        return jax.block_until_ready(mbhead_pallas(
            x, params["conv_w_folded"], params["bn_shift"], params["w1"],
            params["b1"], params["wf"], params["bf"], **kw))

    # Small required shape: batch_tile=1 -> grid=(2,) (pipelined, megacore-ready).
    N = 2
    x = jax.random.normal(k_x, (N, C_in, H, W), jnp.float32)
    out = run(x)
    ref = jax.block_until_ready(_reference(x, params))
    assert out.shape == (N, nc)
    np.testing.assert_allclose(np.asarray(out), np.asarray(ref),
                               rtol=2e-4, atol=2e-4)

    # Larger batch: exercises multi-row batch tiles (in-kernel batch loop with
    # dynamic row indexing, partial unroll) and a multi-step grid.
    N2 = 32
    x2 = jax.random.normal(k_x2, (N2, C_in, H, W), jnp.float32)
    out2 = run(x2, batch_tile=16)
    ref2 = jax.block_until_ready(_reference(x2, params))
    np.testing.assert_allclose(np.asarray(out2), np.asarray(ref2),
                               rtol=2e-4, atol=2e-4)

    # TODO(synk): dropout is identity (inference semantics); BN uses folded
    # running stats (eval mode), not batch statistics.
    print("KERNEL_OK")
</pallas_src>

<mosaic_0001>
module attributes {stable_mosaic.version = 11 : i64} {
  func.func @_mbhead_kernel(%arg0: i32, %arg1: memref<1x4x256xf32, #tpu.memory_space<vmem>>, %arg2: memref<32x5xf32, #tpu.memory_space<vmem>>, %arg3: memref<33x64xf32, #tpu.memory_space<vmem>>, %arg4: memref<65x128xf32, #tpu.memory_space<vmem>>, %arg5: memref<1x1x128xf32, #tpu.memory_space<vmem>>, %arg6: memref<1x32xf32, #tpu.memory_space<vmem>>) attributes {dimension_semantics = [#tpu.dimension_semantics<parallel>], iteration_bounds = array<i64: 2>, scalar_prefetch = 0 : i64, scratch_operands = 1 : i64, tpu.core_type = #tpu.core_type<tc>, window_params = [{transform_indices = @transform_0, window_bounds = array<i64: 1, 4, 256>}, {pipeline_mode = #tpu.pipeline_mode<synchronous>, transform_indices = @transform_1, window_bounds = array<i64: 32, 5>}, {pipeline_mode = #tpu.pipeline_mode<synchronous>, transform_indices = @transform_2, window_bounds = array<i64: 33, 64>}, {pipeline_mode = #tpu.pipeline_mode<synchronous>, transform_indices = @transform_3, window_bounds = array<i64: 65, 128>}, {transform_indices = @transform_4, window_bounds = array<i64: 1, 1, 128>}]} {
    %c0 = arith.constant 0 : index
    %c0_0 = arith.constant 0 : index
    %0 = vector.load %arg2[%c0, %c0_0] : memref<32x5xf32, #tpu.memory_space<vmem>>, vector<32x4xf32>
    %c0_1 = arith.constant 0 : index
    %c4 = arith.constant 4 : index
    %1 = vector.load %arg2[%c0_1, %c4] : memref<32x5xf32, #tpu.memory_space<vmem>>, vector<32x1xf32>
    %c0_i32 = arith.constant 0 : i32
    %2 = arith.index_cast %c0_i32 : i32 to index
    %c0_2 = arith.constant 0 : index
    %c0_3 = arith.constant 0 : index
    %3 = vector.load %arg1[%2, %c0_2, %c0_3] : memref<1x4x256xf32, #tpu.memory_space<vmem>>, vector<1x4x256xf32>
    %4 = vector.shape_cast %3 : vector<1x4x256xf32> to vector<4x256xf32>
    %cst = arith.constant dense<0.000000e+00> : vector<32x256xf32>
    %5 = tpu.matmul %0, %4, %cst {dimension_numbers = #tpu.dot_dimension_numbers<[1], [0], [0], [1], [0, 0, 1, 1], [], []>} : vector<32x4xf32>, vector<4x256xf32>, vector<32x256xf32> -> vector<32x256xf32>
    %6 = vector.broadcast %1 : vector<32x1xf32> to vector<32x256xf32>
    %7 = arith.addf %5, %6 : vector<32x256xf32>
    %cst_4 = arith.constant 0.000000e+00 : f32
    %8 = vector.broadcast %cst_4 : f32 to vector<32x256xf32>
    %9 = arith.maximumf %7, %8 : vector<32x256xf32>
    %cst_5 = arith.constant dense<0.000000e+00> : vector<32xf32>
    %10 = vector.multi_reduction <add>, %9, %cst_5 [1] : vector<32x256xf32> to vector<32xf32>
    %11 = vector.shape_cast %10 : vector<32xf32> to vector<32x1xf32>
    %cst_6 = arith.constant 3.906250e-03 : f32
    %12 = vector.broadcast %cst_6 : f32 to vector<32x1xf32>
    %13 = arith.mulf %11, %12 : vector<32x1xf32>
    %14 = tpu.transpose %13, [1, 0] : vector<32x1xf32> -> vector<1x32xf32>
    %15 = arith.index_cast %c0_i32 : i32 to index
    %c0_7 = arith.constant 0 : index
    %16 = vector.load %arg6[%15, %c0_7] : memref<1x32xf32, #tpu.memory_space<vmem>>, vector<1x32xf32>
    tpu.vector_store %arg6[%15, %c0_7], %14 {strides = array<i32>} : memref<1x32xf32, #tpu.memory_space<vmem>>, vector<1x32xf32>,
    %c1_i32 = arith.constant 1 : i32
    %c0_8 = arith.constant 0 : index
    %c0_9 = arith.constant 0 : index
    %17 = vector.load %arg6[%c0_8, %c0_9] : memref<1x32xf32, #tpu.memory_space<vmem>>, vector<1x32xf32>
    %c0_10 = arith.constant 0 : index
    %c0_11 = arith.constant 0 : index
    %18 = vector.load %arg3[%c0_10, %c0_11] : memref<33x64xf32, #tpu.memory_space<vmem>>, vector<32x64xf32>
    %c32 = arith.constant 32 : index
    %c0_12 = arith.constant 0 : index
    %19 = vector.load %arg3[%c32, %c0_12] : memref<33x64xf32, #tpu.memory_space<vmem>>, vector<1x64xf32>
    %cst_13 = arith.constant dense<0.000000e+00> : vector<1x64xf32>
    %20 = tpu.matmul %17, %18, %cst_13 {dimension_numbers = #tpu.dot_dimension_numbers<[1], [0], [0], [1], [0, 0, 1, 1], [], []>} : vector<1x32xf32>, vector<32x64xf32>, vector<1x64xf32> -> vector<1x64xf32>
    %21 = arith.addf %20, %19 : vector<1x64xf32>
    %cst_14 = arith.constant 3.000000e+00 : f32
    %22 = vector.broadcast %cst_14 : f32 to vector<1x64xf32>
    %23 = arith.addf %21, %22 : vector<1x64xf32>
    %cst_15 = arith.constant 0.000000e+00 : f32
    %cst_16 = arith.constant 6.000000e+00 : f32
    %24 = vector.broadcast %cst_15 : f32 to vector<1x64xf32>
    %25 = arith.maximumf %24, %23 : vector<1x64xf32>
    %26 = vector.broadcast %cst_16 : f32 to vector<1x64xf32>
    %27 = arith.minimumf %26, %25 : vector<1x64xf32>
    %28 = arith.mulf %21, %27 : vector<1x64xf32>
    %cst_17 = arith.constant 0.166666672 : f32
    %29 = vector.broadcast %cst_17 : f32 to vector<1x64xf32>
    %30 = arith.mulf %28, %29 : vector<1x64xf32>
    %c0_18 = arith.constant 0 : index
    %c0_19 = arith.constant 0 : index
    %31 = vector.load %arg4[%c0_18, %c0_19] : memref<65x128xf32, #tpu.memory_space<vmem>>, vector<64x128xf32>
    %c64 = arith.constant 64 : index
    %c0_20 = arith.constant 0 : index
    %32 = vector.load %arg4[%c64, %c0_20] : memref<65x128xf32, #tpu.memory_space<vmem>>, vector<1x128xf32>
    %cst_21 = arith.constant dense<0.000000e+00> : vector<1x128xf32>
    %33 = tpu.matmul %30, %31, %cst_21 {dimension_numbers = #tpu.dot_dimension_numbers<[1], [0], [0], [1], [0, 0, 1, 1], [], []>} : vector<1x64xf32>, vector<64x128xf32>, vector<1x128xf32> -> vector<1x128xf32>
    %34 = arith.addf %33, %32 : vector<1x128xf32>
    %35 = vector.shape_cast %34 : vector<1x128xf32> to vector<1x1x128xf32>
    %c0_22 = arith.constant 0 : index
    %c0_23 = arith.constant 0 : index
    %c0_24 = arith.constant 0 : index
    %36 = vector.load %arg5[%c0_22, %c0_23, %c0_24] : memref<1x1x128xf32, #tpu.memory_space<vmem>>, vector<1x1x128xf32>
    tpu.vector_store %arg5[%c0_22, %c0_23, %c0_24], %35 {strides = array<i32>} : memref<1x1x128xf32, #tpu.memory_space<vmem>>, vector<1x1x128xf32>,
    return
  }
  func.func @transform_0(%arg0: i32) -> (i32, i32, i32) {
    %c0_i32 = arith.constant 0 : i32
    %c0_i32_0 = arith.constant 0 : i32
    %c0_i32_1 = arith.constant 0 : i32
    return %arg0, %c0_i32, %c0_i32_0 : i32, i32, i32
  }
  func.func @transform_1(%arg0: i32) -> (i32, i32) {
    %c0_i32 = arith.constant 0 : i32
    %c0_i32_0 = arith.constant 0 : i32
    %c0_i32_1 = arith.constant 0 : i32
    return %c0_i32, %c0_i32_0 : i32, i32
  }
  func.func @transform_2(%arg0: i32) -> (i32, i32) {
    %c0_i32 = arith.constant 0 : i32
    %c0_i32_0 = arith.constant 0 : i32
    %c0_i32_1 = arith.constant 0 : i32
    return %c0_i32, %c0_i32_0 : i32, i32
  }
  func.func @transform_3(%arg0: i32) -> (i32, i32) {
    %c0_i32 = arith.constant 0 : i32
    %c0_i32_0 = arith.constant 0 : i32
    %c0_i32_1 = arith.constant 0 : i32
    return %c0_i32, %c0_i32_0 : i32, i32
  }
  func.func @transform_4(%arg0: i32) -> (i32, i32, i32) {
    %c0_i32 = arith.constant 0 : i32
    %c0_i32_0 = arith.constant 0 : i32
    %c0_i32_1 = arith.constant 0 : i32
    return %arg0, %c0_i32, %c0_i32_0 : i32, i32, i32
  }
}

</mosaic_0001>

<bundles_post_ra>
// kernel: tpu_custom_call.1
= control target key start
LH: loop header
LB: loop body
LE: loop exit
PB: predicated region body
PF: predicated region fallthrough
CT: control target
= control target key end

     0   :  { %9 = vsyncpa [#allocation4], 0  ;;  %s972_s0 = inlined_call_operand.hbm [shape: f32[2,4,256], index: 0, kind: input, shape index: {}]   ;;  %s973_s1 = inlined_call_operand.vmem [shape: f32[32,5], index: 1, kind: input, shape index: {}]   ;;  %s974_s2 = inlined_call_operand.vmem [shape: f32[33,64], index: 2, kind: input, shape index: {}]   ;;  %s975_s3 = inlined_call_operand.hbm [shape: f32[65,128], index: 3, kind: input, shape index: {}]   ;;  %s976_s4 = inlined_call_operand.hbm [shape: f32[2,1,128], index: 4, kind: output, shape index: {}]  }
   0x1   :  { %11 = vsyncpa [#allocation4 + $0x1], 0 }
   0x2   :  { %12 = vsyncpa [#allocation7], 0 }
   0x3   :  { %13 = vsyncpa [#allocation5], 0 }
   0x4   :  { %15 = vsyncpa [#allocation5 + $0x1], 0  ;;  %s800_s15 = smov 0   ;;  %s802_s16 = smov 0  }
   0x5   :  { %s804_s17 = smov 0   ;;  %s806_s18 = smov 0  }
   0x6 LB: > { %s158_s21 = sshll.u32 %s975_s3, 4  ;;  %s824_s22 = sadd.s32 4294967295, %s769_s18   ;;  %s769_s18 = sphi %s806_s18, %s986_s18   ;;  %s765_s17 = sphi %s804_s17, %s985_s17   ;;  %s761_s16 = sphi %s802_s16, %s984_s16   ;;  %s757_s15 = sphi %s800_s15, %s983_s15   ;;  %s159_s21 = int_to_ptr.hbm [resolvable:$true] %s158_s21 }
   0x7   : > { %p550_p0 = scmp.ge.s32.totalorder %s769_s18, 1  ;;  %p42_p1 = scmp.eq.s32.totalorder %s824_s22, 0 }
   0x8   : > { %p141_p2 = scmp.lt.s32.totalorder %s769_s18, 3  ;;  %s771_s24 = smov [#allocation6]  }
   0x9   : > { %s160_s25 = sshll.u32 %s771_s24, 4  ;;  %s772_s26 = smov 128   ;;  %s161_s25 = int_to_ptr.vmem [resolvable:$true] %s160_s25 }
   0xa   : > { %p829_p3 = pnand %p550_p0, %p141_p2  ;;  %s773_s27 = smov 8  }
   0xb   : > { %s549_s28 = sadd.s32 4294967294, %s769_s18   ;;  %s840_s29 = sadd.s32 1, %s769_s18  }
   0xc   : > { %p584_p4 = pneg %p829_p3  ;;  %s28_s30 = sadd.s32 1, %s765_s17 }
   0xd   : > { %s25_s5 = ssub.s32 %s769_s18, %s840_s29  ;;  %p35_p7 = scmp.ne.s32.totalorder %s765_s17, %s761_s16 }
   0xe   : > { %p585_p6 = pnand %p584_p4, %p42_p1  ;;  %p26_p8 = scmp.eq.s32.totalorder %s25_s5, 0 }
   0xf   : > { %p36_p9 = scmp.eq.s32.totalorder %s769_s18, 0  ;;  %p41_p10 = scmp.ne.s32.totalorder %s761_s16, %s757_s15 }
  0x10   : > { %587 = dma.hbm_to_vmem [thread:$0]  (!%p585_p6), %s159_s21, 1152, %s161_s25, [#allocation7], %s772_s26, %s772_s26, %s773_s27  }
  0x11   : > { %p128_p11 = scmp.eq.s32.totalorder %s824_s22, 1  ;;  %p856_p12 = por %p42_p1, %p41_p10 }
  0x12   : > { %s852_s6 = scalar_select %p26_p8, %s765_s17, %s28_s30  }
  0x13   : > { %p860_p13 = por %p128_p11, %p35_p7  ;;  %p134_p0 = scmp.eq.s32.totalorder %s549_s28, 1 }
  0x14   : > { %p37_p2 = por %p36_p9, %p35_p7  ;;  %s174_s9 = sand.u32 1, %s765_s17  }
  0x15   : > { %p865_p4 = por %p134_p0, %p41_p10  ;;  %p597_p6 = scmp.lt.s32.totalorder %s769_s18, 2 }
  0x16   : > { %s553_s11 = sshll.u32 %s174_s9, 3  ;;  %s573_s12 = sshll.u32 %s769_s18, 3 }
  0x17   : > { %s183_s19 = scalar_lea.hbm %s972_s0, %s573_s12  ;;  %s178_s21 = scalar_lea.vmem [#allocation3], %s553_s11 }
  0x18   : > { %s185_s20 = sshll.u32 %s183_s19, 4  ;;  %s187_s24 = sshll.u32 %s178_s21, 4  ;;  %s186_s20 = int_to_ptr.hbm [resolvable:$true] %s185_s20  ;;  %s188_s24 = int_to_ptr.vmem [resolvable:$true] %s187_s24 }
  0x19   : > { %p874_p8 = pnand %p597_p6, %p37_p2  ;;  %s175_s26 = scalar_lea.sflag [#allocation4], %s174_s9 }
  0x1a   : > { %s669_s27 = sshra.s32 %s186_s20, 4  ;;  %s676_s11 = scalar_lea.hbm %s972_s0, 16  ;;  %s670_s27 = int_to_ptr.hbm [resolvable:$true] %s669_s27 }
  0x1b   : > { %s671_s28 = scalar_lea.hbm %s670_s27, 8  ;;  %p673_p9 = pneg %p874_p8 }
  0x1c   : > { %p672_p7 = scmp.ne.s32.totalorder %s670_s27, %s671_s28  ;;  %p677_p0 = scmp.lt.s32.totalorder %s670_s27, %s972_s0 }
  0x1d   : > { %p678_p2 = scmp.lt.s32.totalorder %s676_s11, %s671_s28 }
  0x1e   : > { %p674_p10 = pnand %p673_p9, %p672_p7 }
  0x1f   : > { %p679_p6 = por %p678_p2, %p677_p0 }
  0x20   : > { %p675_p11 = pneg %p674_p10 }
  0x22   : > { %p680_p5 = pnand %p679_p6, %p675_p11 }
  0x24   : > { %683 = shalt.err (!%p680_p5)
}
  0x25   : > { %591 = dma.hbm_to_vmem [thread:$0]  (!%p874_p8), %s186_s20, 128, %s188_s24, %s175_s26  }
  0x26   : > { %196 = sbr.rel (%p829_p3) target bundleno = 750 (0x2ee), region = 36  ;;  %s891_s9 = sand.u32 (!%p829_p3), 1, %s761_s16  }
  0x27   : > { %s557_s14 = sshll.u32 (!%p829_p3), %s891_s9, 3  ;;  %s199_s19 = scalar_lea.sflag (!%p829_p3), [#allocation4], %s891_s9 }
  0x28   : > { %s202_s21 = scalar_lea.vmem (!%p829_p3), [#allocation3], %s557_s14 }
  0x2b   : > { %744 = dma.done.wait (%p856_p12), %s199_s19, 128  }
  0x2c   : > { %746 = vsyncadd (%p856_p12), %s199_s19, 4294967168 }
  0x2d   : > { %748 = dma.done.wait (%p42_p1), [#allocation7], 1152  }
  0x2e   : > { %750 = vsyncadd (%p42_p1), [#allocation7], 4294966144  ;;  %v774_v0 = vmov 4   ;;  %v236_v1 = vld [vmem:[%s202_s21] sm:$0xff]  ;;  %v232_v2 = vld [vmem:[%s973_s1] sm:$0xff]  ;;  %vm270_vm0 = vcmask 1043456   ;;  %s469_s7 = scalar_lea.hbm %s976_s4, %s824_s22 }
  0x2f   : > { %637 = vset.pattern.permute.xlu0 %v774_v0  ;;  %638 = vset.pattern.permute.xlu1 %v774_v0  ;;  %258 = vst [vmem:[#allocation1] ss:$2 sm:$0xff] %v236_v1  ;;  %v234_v3 = vld [vmem:[%s973_s1 + $0x10] sm:$0xff]  ;;  %vm261_vm1 = vcmask 31744   ;;  %v235_v6 = vld [vmem:[%s973_s1 + $0x18] sm:$0xff]  ;;  %v233_v7 = vld [vmem:[%s973_s1 + $0x8] sm:$0xff] }
  0x30   : > { %239 = vperm.xlu0 %637, %v232_v2   ;;  %249 = vperm.xlu1 %638, %v234_v3   ;;  %v395_v48 = vld [vmem:[%s974_s2 + $0x18] sm:$0xff]  ;;  %v394_v49 = vld [vmem:[%s974_s2 + $0x10] sm:$0xff]  ;;  %v393_v50 = vld [vmem:[%s974_s2 + $0x8] sm:$0xff]  ;;  %vm389_vm2 = vcmask 253952   ;;  %vm397_vm3 = vcmask 261120   ;;  %vm435_vm4 = vcmask 523264  }
  0x31   : > { %v392_v51 = vld [vmem:[%s974_s2] sm:$0xff]  ;;  %v433_v52 = vld [vmem:[#allocation6 + $0x38] sm:$0xff]  ;;  %v432_v55 = vld [vmem:[#allocation6 + $0x30] sm:$0xff]  ;;  %s231_s26 = scalar_lea.vmem [#allocation8], %s891_s9  ;;  %s473_s28 = sshll.u32 %s469_s7, 4  ;;  %s474_s28 = int_to_ptr.hbm [resolvable:$true] %s473_s28 }
  0x32   : > { %447 = vmatpush.msra.mxu3 %v433_v52  ;;  %v431_v56 = vld [vmem:[#allocation6 + $0x28] sm:$0xff]  ;;  %v430_v57 = vld [vmem:[#allocation6 + $0x20] sm:$0xff]  ;;  %v429_v58 = vld [vmem:[#allocation6 + $0x18] sm:$0xff]  ;;  %s471_s27 = sshll.u32 %s231_s26, 4  ;;  %s461_s30 = scalar_lea.sflag [#allocation5], %s891_s9  ;;  %s472_s27 = int_to_ptr.vmem [resolvable:$true] %s471_s27 }
  0x33   : > { %v428_v59 = vld [vmem:[#allocation6 + $0x10] sm:$0xff]  ;;  %v427_v60 = vld [vmem:[#allocation6 + $0x8] sm:$0xff]  ;;  %v426_v61 = vld [vmem:[#allocation6] sm:$0xff]  ;;  %s713_s5 = sshra.s32 %s474_s28, 4  ;;  %s719_s22 = scalar_lea.hbm %s976_s4, 2  ;;  %s714_s5 = int_to_ptr.hbm [resolvable:$true] %s713_s5 }
  0x34   : > { %448 = vmatpush.msra.mxu3 %v432_v55  ;;  %v396_v62 = vld [vmem:[%s974_s2 + $0x20] sm:$0x1]  ;;  %s715_s11 = scalar_lea.hbm %s714_s5, 1  ;;  %p720_p12 = scmp.lt.s32.totalorder %s714_s5, %s976_s4 }
  0x35   : > { %p716_p1 = scmp.ne.s32.totalorder %s714_s5, %s715_s11  ;;  %p721_p8 = scmp.lt.s32.totalorder %s719_s22, %s715_s11 }
  0x36   : > { %v259_v4 = vld.sshfl [vmem:[#allocation1] sm:$0xff pattern:$0x75316420]  ;;  %v260_v5 = vld.sshfl [vmem:[#allocation1 + $0x8] sm:$0xff pattern:$0x75316420]  ;;  %449 = vmatpush.msra.mxu3 %v431_v56 }
  0x37   : > { %559 = vmatpush.msk.msra.mxu0 %vm270_vm0, %v259_v4  ;;  %564 = vmatpush.msk.msra.mxu1 %vm270_vm0, %v260_v5  ;;  %p717_p3 = pnand %p716_p1, %p860_p13  ;;  %p722_p7 = por %p721_p8, %p720_p12 }
  0x38   : > { %560 = vmatmul.msk.f32.vlgmr.msra.gmra.mxu0 %vm261_vm1, %v232_v2  ;;  %565 = vmatmul.msk.f32.vlgmr.msra.gmra.mxu1 %vm261_vm1, %v232_v2 }
  0x39   : > { %574 = vmatpush.msk.msra.mxu2 %vm270_vm0, %v259_v4  ;;  %244 = vperm.xlu0 %637, %v233_v7   ;;  %p718_p5 = pneg %p717_p3 }
  0x3a   : > { %563 = vmatmul.msk.f32.vlgmr.msra.gmra.mxu2 %vm261_vm1, %v235_v6  ;;  %254 = vperm.xlu1 %638, %v235_v6  }
  0x3b   : > { %575 = vmatpush.msk.msrb.mxu2 %vm270_vm0, %v260_v5  ;;  %450 = vmatpush.msra.mxu3 %v430_v57  ;;  %p723_p9 = pnand %p722_p7, %p718_p5 }
  0x3d   : > { %413 = vmatpush.msra.mxu2 %v395_v48  ;;  %451 = vmatpush.msra.mxu3 %v429_v58 }
  0x3f   : > { %414 = vmatpush.msra.mxu2 %v394_v49  ;;  %452 = vmatpush.msra.mxu3 %v428_v59 }
  0x40   : > { %561 = vmatmul.msk.f32.gmra.mxu0 %vm261_vm1, %v233_v7  ;;  %566 = vmatmul.msk.f32.gmra.mxu1 %vm261_vm1, %v233_v7 }
  0x41   : > { %415 = vmatpush.msra.mxu2 %v393_v50  ;;  %453 = vmatpush.msra.mxu3 %v427_v60 }
  0x42   : > { %568 = vmatmul.msk.f32.vlgmr.msrb.gmra.mxu2 %vm261_vm1, %v235_v6  ;;  %v434_v6 = vld [vmem:[#allocation6 + $0x40] sm:$0x1] }
  0x43   : > { %416 = vmatpush.msra.mxu2 %v392_v51  ;;  %454 = vmatpush.msra.mxu3 %v426_v61 }
  0x48   : > { %562 = vmatmul.msk.f32.gmra.mxu0 %vm261_vm1, %v234_v3  ;;  %567 = vmatmul.msk.f32.gmra.mxu1 %vm261_vm1, %v234_v3 }
  0xa2   : > { %v240_v8 = vpop.permute.xlu0 %239  ;;  %v250_v9 = vpop.permute.xlu1 %249 }
  0xab   : > { %v245_v17 = vpop.permute.xlu0 %244 }
  0xac   : > { %v255_v23 = vpop.permute.xlu1 %254 }
  0xb5   : > { %v292_v10 = vpop.f32.mrf.mxu0  ;;  %v321_v11 = vpop.f32.mrf.mxu1 }
  0xb6   : > { %v293_v12 = vadd.f32 %v292_v10, %v240_v8  ;;  %v322_v13 = vadd.f32 %v321_v11, %v240_v8 }
  0xb8   : > { %v333_v14 = vmax.f32 %v293_v12, 0.0  ;;  %v334_v15 = vmax.f32 %v322_v13, 0.0 }
  0xba   : > { %v341_v16 = vadd.f32 %v334_v15, %v333_v14 }
  0xbc   : > { %342 = vadd.xlane.f32.xlu2 %v341_v16 }
  0xbd   : > { %v301_v18 = vpop.f32.mrf.mxu2  ;;  %v295_v19 = vpop.f32.mrf.mxu0 }
  0xbe   : > { %v296_v20 = vadd.f32 %v295_v19, %v245_v17  ;;  %v324_v21 = vpop.f32.mrf.mxu1  ;;  %v302_v26 = vadd.f32 %v301_v18, %v255_v23 }
  0xbf   : > { %v325_v22 = vadd.f32 %v324_v21, %v245_v17 }
  0xc0   : > { %v335_v24 = vmax.f32 %v296_v20, 0.0  ;;  %v339_v31 = vmax.f32 %v302_v26, 0.0 }
  0xc1   : > { %v336_v25 = vmax.f32 %v325_v22, 0.0 }
  0xc3   : > { %v344_v27 = vadd.f32 %v336_v25, %v335_v24 }
  0xc5   : > { %345 = vadd.xlane.f32.xlu2 %v344_v27  ;;  %v330_v28 = vpop.f32.mrf.mxu2  ;;  %v298_v29 = vpop.f32.mrf.mxu0 }
  0xc6   : > { %v331_v30 = vadd.f32 %v330_v28, %v255_v23  ;;  %v299_v32 = vadd.f32 %v298_v29, %v250_v9  ;;  %v327_v33 = vpop.f32.mrf.mxu1 }
  0xc7   : > { %v328_v34 = vadd.f32 %v327_v33, %v250_v9 }
  0xc8   : > { %v340_v35 = vmax.f32 %v331_v30, 0.0  ;;  %v337_v36 = vmax.f32 %v299_v32, 0.0 }
  0xc9   : > { %v338_v37 = vmax.f32 %v328_v34, 0.0 }
  0xca   : > { %v350_v38 = vadd.f32 %v340_v35, %v339_v31 }
  0xcb   : > { %v347_v39 = vadd.f32 %v338_v37, %v337_v36 }
  0xcc   : > { %351 = vadd.xlane.f32.xlu1 %v350_v38 }
  0xcd   : > { %348 = vadd.xlane.f32.xlu0 %v347_v39 }
 0x12f   : > { %v343_v40 = vpop.xlane.xlu2 %342 }
 0x130   : > { %v353_v41 = vmul.f32 0.00390625, %v343_v40 }
 0x132   : > { %357 = vxpose.xlu2.b32.start [1/4] (short) (narrow) %v353_v41, 8 }
 0x138   : > { %v346_v42 = vpop.xlane.xlu2 %345 }
 0x139   : > { %v354_v43 = vmul.f32 0.00390625, %v346_v42 }
 0x13b   : > { %358 = vxpose.xlu2.b32.cont [2/4] (short) (narrow) %v354_v43, 8 }
 0x13f   : > { %v352_v46 = vpop.xlane.xlu1 %351 }
 0x140   : > { %v349_v44 = vpop.xlane.xlu0 %348  ;;  %v356_v47 = vmul.f32 0.00390625, %v352_v46 }
 0x141   : > { %v355_v45 = vmul.f32 0.00390625, %v349_v44 }
 0x143   : > { %359 = vxpose.xlu2.b32.cont [3/4] (short) (narrow) %v355_v45, 8 }
 0x14b   : > { %360 = vxpose.xlu2.b32.end [4/4] (short) (narrow) %v356_v47, 8 }
 0x1cc   : > { %v373_v53 = vpop.trf.xlu2 }
 0x1cd   : > { %390 = vst.msk [vmem:[#allocation2] sm:$0x1] %vm389_vm2, %v373_v53 }
 0x1d4   : > { %v391_v54 = vld [vmem:[#allocation2] sm:$0x1] }
 0x1d5   : > { %569 = vmatmul.msk.f32.vlgmr.msra.gmra.mxu2 %vm397_vm3, %v391_v54 }
 0x258   : > { %v418_v63 = vpop.f32.mrf.mxu2 }
 0x259   : > { %v419_v0 = vadd.f32 %v418_v63, %v396_v62 }
 0x25b   : > { %v421_v1 = vadd.f32 3.0, %v419_v0 }
 0x25d   : > { %v422_v2 = vmax.f32 %v421_v1, 0.0 }
 0x25f   : > { %v423_v3 = vmin.f32 %v422_v2, 6.0 }
 0x261   : > { %v424_v4 = vmul.f32 %v423_v3, %v419_v0 }
 0x263   : > { %v425_v5 = vmul.f32 0.16666667, %v424_v4 }
 0x265   : > { %570 = vmatmul.msk.f32.vlgmr.msra.gmra.mxu3 %vm435_vm4, %v425_v5 }
 0x2e8   : > { %v456_v7 = vpop.f32.mrf.mxu3 }
 0x2e9   : > { %v457_v8 = vadd.f32 %v456_v7, %v434_v6 }
 0x2eb   : > { %459 = vst [vmem:[%s231_s26] sm:$0x1] %v457_v8 }
 0x2ec   : > { %726 = shalt.err (!%p723_p9)
}
 0x2ed   : > { %582 = dma.vmem_to_hbm [thread:$0]  (%p860_p13), %s472_s27, 16, %s474_s28, %s461_s30  }
 0x2ee PF: > { %s485_s9 = sand.u32 1, %s757_s15   ;;  %p982_p10 = scmp.ge.s32.totalorder %s769_s18, 2 }
 0x2ef   : > { %s486_s21 = scalar_lea.sflag [#allocation5], %s485_s9 }
 0x2f0   : > { %p593_p11 = pnand %p982_p10, %p865_p4 }
 0x2f2   : > { %p594_p0 = pneg %p593_p11 }
 0x2f4   : > { %752 = dma.done.wait (%p594_p0), %s486_s21, 16  }
 0x2f5   : > { %754 = vsyncadd (%p594_p0), %s486_s21, 4294967280  ;;  %p18_p2 = scmp.ge.s32.totalorder %s840_s29, 4   ;;  %s983_s15 = smov %s761_s16 }
 0x2f6   : > { %s984_s16 = smov %s765_s17  ;;  %s985_s17 = smov %s852_s6 }
 0x2f7   : > { %s986_s18 = smov %s840_s29  ;;  %20 = sbr.rel (!%p18_p2) target bundleno = 6 (0x6), region = 85 }
 0x2fc   :  { %491 = vsyncpa [#allocation4], 1 }
 0x2fd   :  { %493 = vsyncpa [#allocation4 + $0x1], 1 }
 0x2fe   :  { %494 = vsyncpa [#allocation7], 1 }
 0x2ff   :  { %495 = vsyncpa [#allocation5], 1 }
 0x300   :  { %497 = vsyncpa [#allocation5 + $0x1], 1 }

</bundles_post_ra>
